<compile_context>
chip_gen: v7x
topology: tpu7x:2x2x1
jax: 0.10.0
libtpu: 0.0.40
codegen_flags: <defaults>
</compile_context>

<pallas_src>
import jax
import jax.numpy as jnp
from jax.experimental import pallas as pl
from jax.experimental.pallas import tpu as pltpu


def _round_up(x, m):
    return ((x + m - 1) // m) * m


# Minimum rows per TensorCore before it is worth splitting one tile in two
# just to engage the second core (v7x megacore).
_MIN_ROWS_PER_TC = 512


def _summary_net_kernel(x_ref, w_ref, b_ref, o_ref):
    # x_ref: (TILE_N, D_in), w_ref: (D_in, D_out), b_ref: (1, D_out),
    # o_ref: (TILE_N, D_out)
    acc = jnp.dot(x_ref[...], w_ref[...],
                  preferred_element_type=jnp.float32)       # MXU matmul, f32 acc
    acc = acc + b_ref[...].astype(jnp.float32)               # bias broadcast
    acc = jnp.maximum(acc, 0.0)                              # ReLU (f32 epilogue)
    o_ref[...] = acc.astype(o_ref.dtype)                     # cast only at store


def prepare_summary_net_params(weight, bias, dtype=None):
    """One-time parameter prep (call at init, NOT per forward).

    weight: (out_dim, input_dim)  -- PyTorch nn.Linear layout
    bias:   (out_dim,)
    dtype:  optional streaming dtype (e.g. jnp.bfloat16 on v6e/v7x)
    Returns:
      w_t: (input_dim, out_dim) pre-transposed weight  (no padding)
      b:   (1, out_dim)
    """
    w_t = jnp.transpose(weight)                               # (D_in, D_out)
    b = jnp.reshape(bias, (1, -1))                            # (1, D_out)
    if dtype is not None:
        w_t = w_t.astype(dtype)
        b = b.astype(dtype)
    return w_t, b


def summary_net_forward(x, w_t, b, input_dim, out_dim, tile_n=2048):
    """Pallas equivalent of SummaryNet.forward.

    x:    any shape whose total element count is a multiple of input_dim
          (dtype f32, or bf16 for bandwidth-halved streaming)
    w_t:  (input_dim, out_dim) from prepare_summary_net_params
    b:    (1, out_dim)
    returns: (N, 1, out_dim) in x.dtype, where N = x.size // input_dim
    """
    x2d = jnp.reshape(x, (-1, input_dim))                     # (N, D_in)
    n = x2d.shape[0]

    # Row-tile selection.  tile_n (default 2048) must be a multiple of 8.
    if n <= tile_n:
        if n >= 2 * _MIN_ROWS_PER_TC:
            # Enough work to split across v7x's 2 TensorCores: force >=2 tiles.
            tn = _round_up(pl.cdiv(n, 2), 8)
        else:
            tn = n                      # full-extent block (always legal)
    else:
        tn = tile_n                     # partial last tile handled by Pallas
    grid = (pl.cdiv(n, tn),)

    itemsize = jnp.dtype(x2d.dtype).itemsize
    cost = pl.CostEstimate(
        flops=2 * n * input_dim * out_dim,
        transcendentals=0,
        bytes_accessed=(n * input_dim * itemsize                       # x
                        + w_t.size * jnp.dtype(w_t.dtype).itemsize     # W
                        + b.size * jnp.dtype(b.dtype).itemsize         # bias
                        + n * out_dim * itemsize),                     # out
    )

    out2d = pl.pallas_call(
        _summary_net_kernel,
        out_shape=jax.ShapeDtypeStruct((n, out_dim), x2d.dtype),
        grid=grid,
        in_specs=[
            # Streamed activation rows (double-buffered by default).
            pl.BlockSpec((tn, input_dim), lambda i: (i, 0)),
            # VMEM-resident weight / bias: constant index_map, single buffer.
            pl.BlockSpec((input_dim, out_dim), lambda i: (0, 0),
                         pipeline_mode=pl.Buffered(1)),
            pl.BlockSpec((1, out_dim), lambda i: (0, 0),
                         pipeline_mode=pl.Buffered(1)),
        ],
        out_specs=pl.BlockSpec((tn, out_dim), lambda i: (i, 0)),
        compiler_params=pltpu.CompilerParams(
            dimension_semantics=("parallel",),   # row tiles independent (v7x TCs)
        ),
        cost_estimate=cost,
    )(x2d, w_t, b)

    # out_dim columns are produced directly (no pad, no slice) -> this reshape
    # is a free metadata op.
    return jnp.reshape(out2d, (n, 1, out_dim))                # match (N, 1, D_out)


if __name__ == "__main__":
    # Module defaults: input_dim = out_dim = 320.
    INPUT_DIM = 320
    OUT_DIM = 320

    key = jax.random.PRNGKey(0)
    kx, kw, kb = jax.random.split(key, 3)

    # Small input whose total size is a multiple of INPUT_DIM: (2, 4, 320) -> N = 8
    x = jax.random.normal(kx, (2, 4, INPUT_DIM), dtype=jnp.float32)

    # Deterministic nn.Linear-style init (uniform in +/- 1/sqrt(fan_in))
    bound = 1.0 / (INPUT_DIM ** 0.5)
    weight = jax.random.uniform(kw, (OUT_DIM, INPUT_DIM), jnp.float32, -bound, bound)
    bias = jax.random.uniform(kb, (OUT_DIM,), jnp.float32, -bound, bound)

    # ---- f32 path ----------------------------------------------------------
    w_t, b = prepare_summary_net_params(weight, bias)
    out = summary_net_forward(x, w_t, b, INPUT_DIM, OUT_DIM)
    out = jax.block_until_ready(out)

    ref = jnp.maximum(jnp.reshape(x, (-1, INPUT_DIM)) @ weight.T + bias, 0.0)
    ref = jnp.reshape(ref, (-1, 1, OUT_DIM))
    assert out.shape == (8, 1, OUT_DIM), out.shape
    assert jnp.allclose(out, ref, atol=1e-5, rtol=1e-5)

    # ---- bf16 streaming path (v6e/v7x): upstream emits bf16 x, params cast
    # once at init; f32 accumulate + f32 epilogue preserved inside the kernel.
    x_bf = x.astype(jnp.bfloat16)
    w_t_bf, b_bf = prepare_summary_net_params(weight, bias, dtype=jnp.bfloat16)
    out_bf = summary_net_forward(x_bf, w_t_bf, b_bf, INPUT_DIM, OUT_DIM)
    out_bf = jax.block_until_ready(out_bf)

    ref_bf = jnp.maximum(
        x_bf.astype(jnp.float32).reshape(-1, INPUT_DIM)
        @ w_t_bf.astype(jnp.float32) + b_bf.astype(jnp.float32), 0.0,
    ).reshape(-1, 1, OUT_DIM)
    assert out_bf.shape == (8, 1, OUT_DIM), out_bf.shape
    assert jnp.allclose(out_bf.astype(jnp.float32), ref_bf, atol=3e-2, rtol=3e-2)

    print("KERNEL_OK")
</pallas_src>

<mosaic_0001>
module attributes {stable_mosaic.version = 11 : i64} {
  func.func @_summary_net_kernel(%arg0: i32, %arg1: memref<8x320xf32, #tpu.memory_space<vmem>>, %arg2: memref<320x320xf32, #tpu.memory_space<vmem>>, %arg3: memref<1x320xf32, #tpu.memory_space<vmem>>, %arg4: memref<8x320xf32, #tpu.memory_space<vmem>>) attributes {dimension_semantics = [#tpu.dimension_semantics<parallel>], iteration_bounds = array<i64: 1>, scalar_prefetch = 0 : i64, scratch_operands = 0 : i64, tpu.core_type = #tpu.core_type<tc>, window_params = [{transform_indices = @transform_0, window_bounds = array<i64: 8, 320>}, {pipeline_mode = #tpu.pipeline_mode<synchronous>, transform_indices = @transform_1, window_bounds = array<i64: 320, 320>}, {pipeline_mode = #tpu.pipeline_mode<synchronous>, transform_indices = @transform_2, window_bounds = array<i64: 1, 320>}, {transform_indices = @transform_3, window_bounds = array<i64: 8, 320>}]} {
    %c0 = arith.constant 0 : index
    %c0_0 = arith.constant 0 : index
    %0 = vector.load %arg1[%c0, %c0_0] : memref<8x320xf32, #tpu.memory_space<vmem>>, vector<8x320xf32>
    %c0_1 = arith.constant 0 : index
    %c0_2 = arith.constant 0 : index
    %1 = vector.load %arg2[%c0_1, %c0_2] : memref<320x320xf32, #tpu.memory_space<vmem>>, vector<320x320xf32>
    %cst = arith.constant dense<0.000000e+00> : vector<8x320xf32>
    %2 = tpu.matmul %0, %1, %cst {dimension_numbers = #tpu.dot_dimension_numbers<[1], [0], [0], [1], [0, 0, 1, 1], [], []>} : vector<8x320xf32>, vector<320x320xf32>, vector<8x320xf32> -> vector<8x320xf32>
    %c0_3 = arith.constant 0 : index
    %c0_4 = arith.constant 0 : index
    %3 = vector.load %arg3[%c0_3, %c0_4] : memref<1x320xf32, #tpu.memory_space<vmem>>, vector<1x320xf32>
    %4 = vector.broadcast %3 : vector<1x320xf32> to vector<8x320xf32>
    %5 = arith.addf %2, %4 : vector<8x320xf32>
    %cst_5 = arith.constant 0.000000e+00 : f32
    %6 = vector.broadcast %cst_5 : f32 to vector<8x320xf32>
    %7 = arith.maximumf %5, %6 : vector<8x320xf32>
    %c0_6 = arith.constant 0 : index
    %c0_7 = arith.constant 0 : index
    %8 = vector.load %arg4[%c0_6, %c0_7] : memref<8x320xf32, #tpu.memory_space<vmem>>, vector<8x320xf32>
    tpu.vector_store %arg4[%c0_6, %c0_7], %7 {strides = array<i32>} : memref<8x320xf32, #tpu.memory_space<vmem>>, vector<8x320xf32>,
    return
  }
  func.func @transform_0(%arg0: i32) -> (i32, i32) {
    %c0_i32 = arith.constant 0 : i32
    %c0_i32_0 = arith.constant 0 : i32
    return %arg0, %c0_i32 : i32, i32
  }
  func.func @transform_1(%arg0: i32) -> (i32, i32) {
    %c0_i32 = arith.constant 0 : i32
    %c0_i32_0 = arith.constant 0 : i32
    %c0_i32_1 = arith.constant 0 : i32
    return %c0_i32, %c0_i32_0 : i32, i32
  }
  func.func @transform_2(%arg0: i32) -> (i32, i32) {
    %c0_i32 = arith.constant 0 : i32
    %c0_i32_0 = arith.constant 0 : i32
    %c0_i32_1 = arith.constant 0 : i32
    return %c0_i32, %c0_i32_0 : i32, i32
  }
  func.func @transform_3(%arg0: i32) -> (i32, i32) {
    %c0_i32 = arith.constant 0 : i32
    %c0_i32_0 = arith.constant 0 : i32
    return %arg0, %c0_i32 : i32, i32
  }
}

</mosaic_0001>

<bundles_post_ra>
// kernel: tpu_custom_call.1
= control target key start
LH: loop header
LB: loop body
LE: loop exit
PB: predicated region body
PF: predicated region fallthrough
CT: control target
= control target key end

     0   :  { %8 = vsyncpa [#allocation3], 0  ;;  %s845_s0 = inlined_call_operand.hbm [shape: f32[8,320], index: 0, kind: input, shape index: {}]   ;;  %s846_s1 = inlined_call_operand.hbm [shape: f32[320,320], index: 1, kind: input, shape index: {}]   ;;  %s847_s2 = inlined_call_operand.vmem [shape: f32[1,320], index: 2, kind: input, shape index: {}]   ;;  %s848_s3 = inlined_call_operand.hbm [shape: f32[8,320], index: 3, kind: output, shape index: {}]  }
   0x1   :  { %9 = vsyncpa [#allocation6], 0 }
   0x2   :  { %10 = vsyncpa [#allocation4], 0  ;;  %s762_s12 = smov [#allocation2]   ;;  %s763_s14 = smov [#allocation5]  }
   0x3   :  { %s17_s13 = sshll.u32 %s762_s12, 4  ;;  %s26_s15 = sshll.u32 %s763_s14, 4  ;;  %s18_s13 = int_to_ptr.vmem [resolvable:$true] %s17_s13  ;;  %s790_s15 = int_to_ptr.vmem [resolvable:$true] %s26_s15 }
   0x4   :  { %s690_s18 = scalar_lea.hbm %s845_s0, 384 }
   0x5   :  { %p691_p0 = scmp.ne.s32.totalorder %s845_s0, %s690_s18  ;;  %p694_p1 = scmp.lt.u32.totalorder %s690_s18, %s845_s0 }
   0x7   :  { %p696_p2 = pnand %p694_p1, %p691_p0 }
   0x9   :  { %699 = shalt.err (!%p696_p2)
}
   0xa   :  { %s700_s23 = scalar_lea.vmem %s18_s13, 384  ;;  %p705_p4 = scmp.lt.s32.totalorder %s18_s13, %s18_s13 }
   0xb   :  { %p701_p3 = scmp.ne.s32.totalorder %s18_s13, %s700_s23  ;;  %p706_p5 = scmp.lt.s32.totalorder %s700_s23, %s700_s23 }
   0xd   :  { %p707_p6 = por %p706_p5, %p705_p4 }
   0xf   :  { %p708_p7 = pnand %p707_p6, %p701_p3 }
  0x11   :  { %711 = shalt.err (!%p708_p7)
}
  0x12   :  { %20 = dma.hbm_to_vmem [thread:$0]  %s845_s0, 384, %s18_s13, [#allocation3]  }
  0x13   :  { %s712_s28 = scalar_lea.hbm %s846_s1, 15360 }
  0x14   :  { %p713_p8 = scmp.ne.s32.totalorder %s846_s1, %s712_s28  ;;  %p716_p9 = scmp.lt.u32.totalorder %s712_s28, %s846_s1 }
  0x16   :  { %p718_p10 = pnand %p716_p9, %p713_p8 }
  0x18   :  { %721 = shalt.err (!%p718_p10)
}
  0x19   :  { %s722_s6 = scalar_lea.vmem %s790_s15, 15360  ;;  %p727_p12 = scmp.lt.s32.totalorder %s790_s15, %s790_s15 }
  0x1a   :  { %p723_p11 = scmp.ne.s32.totalorder %s790_s15, %s722_s6  ;;  %p728_p13 = scmp.lt.s32.totalorder %s722_s6, %s722_s6 }
  0x1c   :  { %p729_p0 = por %p728_p13, %p727_p12 }
  0x1e   :  { %p730_p1 = pnand %p729_p0, %p723_p11 }
  0x20   :  { %733 = shalt.err (!%p730_p1)
}
  0x21   :  { %s764_s0 = smov 384   ;;  %s765_s7 = smov 24  }
  0x22   :  { %32 = dma.hbm_to_vmem [thread:$0]  %s846_s1, 15360, %s790_s15, [#allocation6], %s764_s0, %s764_s0, %s765_s7  }
  0x23   :  { %756 = dma.done.wait [#allocation3], 384  }
  0x24   :  { %757 = vsyncadd [#allocation3], 4294966912 }
  0x25   :  { %758 = dma.done.wait [#allocation6], 15360  }
  0x26   :  { %759 = vsyncadd [#allocation6], 4294951936  ;;  %v766_v0 = vmov 0.0   ;;  %v45_v1 = vld [vmem:[#allocation5 + $0x8] sm:$0xff]  ;;  %v48_v2 = vld [vmem:[#allocation5 + $0x20] sm:$0xff]  ;;  %vm181_vm0 = vcmask 523264  }
  0x27   :  { %320 = vmatprep.mubr.f32.mxu1 %v766_v0  ;;  %v141_v3 = vld [vmem:[#allocation5 + $0x308] sm:$0xff]  ;;  %v554_v4 = vpack.c.bf16 %v48_v2, %v45_v1  ;;  %v144_v5 = vld [vmem:[#allocation5 + $0x320] sm:$0xff]  ;;  %v47_v7 = vld [vmem:[#allocation5 + $0x18] sm:$0xff]  ;;  %vm768_vm1 = vmmov 0   ;;  %s769_s11 = smov [#allocation7]  }
  0x28   :  { %v44_v6 = vld [vmem:[#allocation5] sm:$0xff]  ;;  %v618_v8 = vpack.c.bf16 %v144_v5, %v141_v3  ;;  %v143_v11 = vld [vmem:[#allocation5 + $0x318] sm:$0xff]  ;;  %v54_v14 = vld [vmem:[#allocation5 + $0x50] sm:$0xff]  ;;  %s479_s12 = sshll.u32 %s769_s11, 4  ;;  %s480_s12 = int_to_ptr.vmem [resolvable:$true] %s479_s12 }
  0x29   :  { %v556_v9 = vpack.c.bf16 %v47_v7, %v44_v6  ;;  %v140_v10 = vld [vmem:[#allocation5 + $0x300] sm:$0xff]  ;;  %v51_v12 = vld [vmem:[#allocation5 + $0x38] sm:$0xff]  ;;  %555 = vmatprep.subr.bf16.mxu0 %v554_v4  ;;  %v150_v16 = vld [vmem:[#allocation5 + $0x350] sm:$0xff]  ;;  %p739_p3 = scmp.lt.s32.totalorder %s480_s12, %s480_s12 }
  0x2a   :  { %v620_v13 = vpack.c.bf16 %v143_v11, %v140_v10  ;;  %v147_v15 = vld [vmem:[#allocation5 + $0x338] sm:$0xff]  ;;  %619 = vmatprep.subr.bf16.mxu1 %v618_v8  ;;  %v558_v17 = vpack.c.bf16 %v54_v14, %v51_v12  ;;  %v50_v19 = vld [vmem:[#allocation5 + $0x30] sm:$0xff]  ;;  %v53_v20 = vld [vmem:[#allocation5 + $0x48] sm:$0xff] }
  0x2b   :  { %557 = vmatpush1.bf16.msra.mxu0 %v556_v9  ;;  %v622_v18 = vpack.c.bf16 %v150_v16, %v147_v15  ;;  %v146_v21 = vld [vmem:[#allocation5 + $0x330] sm:$0xff]  ;;  %v560_v22 = vpack.c.bf16 %v53_v20, %v50_v19  ;;  %v149_v23 = vld [vmem:[#allocation5 + $0x348] sm:$0xff]  ;;  %v60_v25 = vld [vmem:[#allocation5 + $0x80] sm:$0xff] }
  0x2c   :  { %621 = vmatpush1.bf16.msra.mxu1 %v620_v13  ;;  %v57_v24 = vld [vmem:[#allocation5 + $0x68] sm:$0xff]  ;;  %559 = vmatprep.subr.bf16.mxu0 %v558_v17  ;;  %v624_v26 = vpack.c.bf16 %v149_v23, %v146_v21  ;;  %v156_v29 = vld [vmem:[#allocation5 + $0x380] sm:$0xff]  ;;  %v59_v32 = vld [vmem:[#allocation5 + $0x78] sm:$0xff] }
  0x2d   :  { %623 = vmatprep.subr.bf16.mxu1 %v622_v18  ;;  %v562_v27 = vpack.c.bf16 %v60_v25, %v57_v24  ;;  %v153_v28 = vld [vmem:[#allocation5 + $0x368] sm:$0xff]  ;;  %v56_v30 = vld [vmem:[#allocation5 + $0x60] sm:$0xff]  ;;  %v155_v34 = vld [vmem:[#allocation5 + $0x378] sm:$0xff] }
  0x2e   :  { %v626_v31 = vpack.c.bf16 %v156_v29, %v153_v28  ;;  %v152_v33 = vld [vmem:[#allocation5 + $0x360] sm:$0xff]  ;;  %v564_v35 = vpack.c.bf16 %v59_v32, %v56_v30  ;;  %v63_v36 = vld [vmem:[#allocation5 + $0x98] sm:$0xff]  ;;  %v66_v37 = vld [vmem:[#allocation5 + $0xb0] sm:$0xff] }
  0x2f   :  { %561 = vmatpush1.bf16.msra.mxu0 %v560_v22  ;;  %v159_v38 = vld [vmem:[#allocation5 + $0x398] sm:$0xff]  ;;  %v628_v39 = vpack.c.bf16 %v155_v34, %v152_v33  ;;  %v566_v40 = vpack.c.bf16 %v66_v37, %v63_v36  ;;  %v162_v41 = vld [vmem:[#allocation5 + $0x3b0] sm:$0xff]  ;;  %v65_v43 = vld [vmem:[#allocation5 + $0xa8] sm:$0xff] }
  0x30   :  { %625 = vmatpush1.bf16.msra.mxu1 %v624_v26  ;;  %563 = vmatprep.subr.bf16.mxu0 %v562_v27  ;;  %v62_v42 = vld [vmem:[#allocation5 + $0x90] sm:$0xff]  ;;  %v630_v44 = vpack.c.bf16 %v162_v41, %v159_v38  ;;  %v161_v46 = vld [vmem:[#allocation5 + $0x3a8] sm:$0xff]  ;;  %v72_v48 = vld [vmem:[#allocation5 + $0xe0] sm:$0xff] }
  0x31   :  { %627 = vmatprep.subr.bf16.mxu1 %v626_v31  ;;  %v158_v45 = vld [vmem:[#allocation5 + $0x390] sm:$0xff]  ;;  %v69_v47 = vld [vmem:[#allocation5 + $0xc8] sm:$0xff]  ;;  %v568_v51 = vpack.c.bf16 %v65_v43, %v62_v42  ;;  %v68_v54 = vld [vmem:[#allocation5 + $0xc0] sm:$0xff] }
  0x32   :  { %v94_v49 = vld [vmem:[#allocation5 + $0x190] sm:$0xff]  ;;  %v97_v50 = vld [vmem:[#allocation5 + $0x1a8] sm:$0xff]  ;;  %v632_v52 = vpack.c.bf16 %v161_v46, %v158_v45  ;;  %v570_v53 = vpack.c.bf16 %v72_v48, %v69_v47  ;;  %v71_v55 = vld [vmem:[#allocation5 + $0xd8] sm:$0xff] }
  0x33   :  { %565 = vmatpush1.bf16.msra.mxu0 %v564_v35  ;;  %v46_v56 = vld [vmem:[#allocation5 + $0x10] sm:$0xff]  ;;  %v634_v57 = vpack.c.bf16 %v97_v50, %v94_v49  ;;  %v49_v58 = vld [vmem:[#allocation5 + $0x28] sm:$0xff]  ;;  %v75_v59 = vld [vmem:[#allocation5 + $0xf8] sm:$0xff]  ;;  %v572_v63 = vpack.c.bf16 %v71_v55, %v68_v54 }
  0x34   :  { %629 = vmatpush1.bf16.msra.mxu1 %v628_v39  ;;  %567 = vmatprep.subr.bf16.mxu0 %v566_v40  ;;  %v78_v60 = vld [vmem:[#allocation5 + $0x110] sm:$0xff]  ;;  %v100_v61 = vld [vmem:[#allocation5 + $0x1c0] sm:$0xff]  ;;  %v103_v62 = vld [vmem:[#allocation5 + $0x1d8] sm:$0xff]  ;;  %v636_v2 = vpack.c.bf16 %v49_v58, %v46_v56 }
  0x35   :  { %631 = vmatprep.subr.bf16.mxu1 %v630_v44  ;;  %v822_v1 = vld [vmem:[#allocation2 + $0x10] sm:$0xff]  ;;  %v574_v3 = vpack.c.bf16 %v78_v60, %v75_v59  ;;  %v74_v4 = vld [vmem:[#allocation5 + $0xf0] sm:$0xff]  ;;  %v77_v5 = vld [vmem:[#allocation5 + $0x108] sm:$0xff]  ;;  %v638_v7 = vpack.c.bf16 %v103_v62, %v100_v61 }
  0x36   :  { %v52_v6 = vld [vmem:[#allocation5 + $0x40] sm:$0xff]  ;;  %v55_v8 = vld [vmem:[#allocation5 + $0x58] sm:$0xff]  ;;  %v81_v9 = vld [vmem:[#allocation5 + $0x128] sm:$0xff]  ;;  %v576_v13 = vpack.c.bf16 %v77_v5, %v74_v4 }
  0x37   :  { %569 = vmatpush1.bf16.msra.mxu0 %v568_v51  ;;  %v84_v10 = vld [vmem:[#allocation5 + $0x140] sm:$0xff]  ;;  %v106_v11 = vld [vmem:[#allocation5 + $0x1f0] sm:$0xff]  ;;  %v109_v12 = vld [vmem:[#allocation5 + $0x208] sm:$0xff]  ;;  %v640_v14 = vpack.c.bf16 %v55_v8, %v52_v6 }
  0x38   :  { %633 = vmatpush1.bf16.msra.mxu1 %v632_v52  ;;  %571 = vmatprep.subr.bf16.mxu0 %v570_v53  ;;  %v578_v15 = vpack.c.bf16 %v84_v10, %v81_v9  ;;  %v80_v16 = vld [vmem:[#allocation5 + $0x120] sm:$0xff]  ;;  %v83_v17 = vld [vmem:[#allocation5 + $0x138] sm:$0xff]  ;;  %v58_v18 = vld [vmem:[#allocation5 + $0x70] sm:$0xff]  ;;  %v642_v19 = vpack.c.bf16 %v109_v12, %v106_v11 }
  0x39   :  { %635 = vmatprep.subr.bf16.mxu1 %v634_v57  ;;  %v61_v20 = vld [vmem:[#allocation5 + $0x88] sm:$0xff]  ;;  %v87_v21 = vld [vmem:[#allocation5 + $0x158] sm:$0xff]  ;;  %v90_v22 = vld [vmem:[#allocation5 + $0x170] sm:$0xff]  ;;  %v580_v25 = vpack.c.bf16 %v83_v17, %v80_v16 }
  0x3a   :  { %v112_v23 = vld [vmem:[#allocation5 + $0x220] sm:$0xff]  ;;  %v115_v24 = vld [vmem:[#allocation5 + $0x238] sm:$0xff]  ;;  %v644_v26 = vpack.c.bf16 %v61_v20, %v58_v18  ;;  %v582_v27 = vpack.c.bf16 %v90_v22, %v87_v21  ;;  %v86_v28 = vld [vmem:[#allocation5 + $0x150] sm:$0xff] }
  0x3b   :  { %573 = vmatpush1.bf16.msra.mxu0 %v572_v63  ;;  %489 = vmatmul.mubr.msk.f32.vlgmr.msra.gmra.mrb[0].mxu1 %vm181_vm0, %v822_v1  ;;  %v89_v29 = vld [vmem:[#allocation5 + $0x168] sm:$0xff]  ;;  %v64_v30 = vld [vmem:[#allocation5 + $0xa0] sm:$0xff]  ;;  %v646_v31 = vpack.c.bf16 %v115_v24, %v112_v23  ;;  %v67_v32 = vld [vmem:[#allocation5 + $0xb8] sm:$0xff] }
  0x3c   :  { %637 = vmatpush3.bf16.msra.mxu1 %v636_v2  ;;  %575 = vmatprep.subr.bf16.mxu0 %v574_v3  ;;  %v93_v33 = vld [vmem:[#allocation5 + $0x188] sm:$0xff]  ;;  %v96_v34 = vld [vmem:[#allocation5 + $0x1a0] sm:$0xff]  ;;  %v118_v35 = vld [vmem:[#allocation5 + $0x250] sm:$0xff]  ;;  %v584_v37 = vpack.c.bf16 %v89_v29, %v86_v28  ;;  %v648_v38 = vpack.c.bf16 %v67_v32, %v64_v30 }
  0x3d   :  { %639 = vmatprep.subr.bf16.mxu1 %v638_v7  ;;  %v121_v36 = vld [vmem:[#allocation5 + $0x268] sm:$0xff]  ;;  %v586_v39 = vpack.c.bf16 %v96_v34, %v93_v33  ;;  %v92_v40 = vld [vmem:[#allocation5 + $0x180] sm:$0xff]  ;;  %v95_v41 = vld [vmem:[#allocation5 + $0x198] sm:$0xff] }
  0x3e   :  { %v70_v42 = vld [vmem:[#allocation5 + $0xd0] sm:$0xff]  ;;  %v650_v43 = vpack.c.bf16 %v121_v36, %v118_v35  ;;  %v73_v44 = vld [vmem:[#allocation5 + $0xe8] sm:$0xff]  ;;  %v99_v45 = vld [vmem:[#allocation5 + $0x1b8] sm:$0xff]  ;;  %v588_v49 = vpack.c.bf16 %v95_v41, %v92_v40 }
  0x3f   :  { %577 = vmatpush1.bf16.msra.mxu0 %v576_v13  ;;  %v102_v46 = vld [vmem:[#allocation5 + $0x1d0] sm:$0xff]  ;;  %v124_v47 = vld [vmem:[#allocation5 + $0x280] sm:$0xff]  ;;  %v127_v48 = vld [vmem:[#allocation5 + $0x298] sm:$0xff]  ;;  %v652_v51 = vpack.c.bf16 %v73_v44, %v70_v42 }
  0x40   :  { %641 = vmatpush3.bf16.msra.mxu1 %v640_v14  ;;  %579 = vmatprep.subr.bf16.mxu0 %v578_v15  ;;  %v98_v50 = vld [vmem:[#allocation5 + $0x1b0] sm:$0xff]  ;;  %v590_v52 = vpack.c.bf16 %v102_v46, %v99_v45  ;;  %v101_v53 = vld [vmem:[#allocation5 + $0x1c8] sm:$0xff]  ;;  %v76_v54 = vld [vmem:[#allocation5 + $0x100] sm:$0xff]  ;;  %v654_v56 = vpack.c.bf16 %v127_v48, %v124_v47 }
  0x41   :  { %643 = vmatprep.subr.bf16.mxu1 %v642_v19  ;;  %v42_v55 = vld [vmem:[#allocation2 + $0x8] sm:$0xff]  ;;  %v79_v57 = vld [vmem:[#allocation5 + $0x118] sm:$0xff]  ;;  %v105_v58 = vld [vmem:[#allocation5 + $0x1e8] sm:$0xff]  ;;  %v592_v62 = vpack.c.bf16 %v101_v53, %v98_v50 }
  0x42   :  { %v108_v59 = vld [vmem:[#allocation5 + $0x200] sm:$0xff]  ;;  %391 = vmatprep.mubr.f32.mxu1 %v42_v55  ;;  %v130_v60 = vld [vmem:[#allocation5 + $0x2b0] sm:$0xff]  ;;  %v133_v61 = vld [vmem:[#allocation5 + $0x2c8] sm:$0xff]  ;;  %249 = vmatprep.mubr.f32.mxu0 %v42_v55  ;;  %v656_v63 = vpack.c.bf16 %v79_v57, %v76_v54 }
  0x43   :  { %581 = vmatpush1.bf16.msra.mxu0 %v580_v25  ;;  %v594_v2 = vpack.c.bf16 %v108_v59, %v105_v58  ;;  %v104_v3 = vld [vmem:[#allocation5 + $0x1e0] sm:$0xff]  ;;  %v107_v4 = vld [vmem:[#allocation5 + $0x1f8] sm:$0xff]  ;;  %v82_v5 = vld [vmem:[#allocation5 + $0x130] sm:$0xff]  ;;  %v658_v6 = vpack.c.bf16 %v133_v61, %v130_v60  ;;  %v166_v61 = vlaneseq }
  0x44   :  { %645 = vmatpush3.bf16.msra.mxu1 %v644_v26  ;;  %583 = vmatprep.subr.bf16.mxu0 %v582_v27  ;;  %v85_v7 = vld [vmem:[#allocation5 + $0x148] sm:$0xff]  ;;  %v111_v8 = vld [vmem:[#allocation5 + $0x218] sm:$0xff]  ;;  %v114_v9 = vld [vmem:[#allocation5 + $0x230] sm:$0xff]  ;;  %v596_v12 = vpack.c.bf16 %v107_v4, %v104_v3 }
  0x45   :  { %647 = vmatprep.subr.bf16.mxu1 %v646_v31  ;;  %v136_v10 = vld [vmem:[#allocation5 + $0x2e0] sm:$0xff]  ;;  %v139_v11 = vld [vmem:[#allocation5 + $0x2f8] sm:$0xff]  ;;  %v660_v13 = vpack.c.bf16 %v85_v7, %v82_v5  ;;  %v598_v14 = vpack.c.bf16 %v114_v9, %v111_v8  ;;  %v110_v15 = vld [vmem:[#allocation5 + $0x210] sm:$0xff]  ;;  %v167_v3 = vshrl.u32 %v166_v61, 7 }
  0x46   :  { %v113_v16 = vld [vmem:[#allocation5 + $0x228] sm:$0xff]  ;;  %v88_v17 = vld [vmem:[#allocation5 + $0x160] sm:$0xff]  ;;  %v662_v18 = vpack.c.bf16 %v139_v11, %v136_v10  ;;  %v91_v19 = vld [vmem:[#allocation5 + $0x178] sm:$0xff] }
  0x47   :  { %585 = vmatpush1.bf16.msra.mxu0 %v584_v37  ;;  %v117_v20 = vld [vmem:[#allocation5 + $0x248] sm:$0xff]  ;;  %v120_v21 = vld [vmem:[#allocation5 + $0x260] sm:$0xff]  ;;  %v600_v22 = vpack.c.bf16 %v113_v16, %v110_v15  ;;  %v664_v23 = vpack.c.bf16 %v91_v19, %v88_v17  ;;  %v119_v26 = vld [vmem:[#allocation5 + $0x258] sm:$0xff]  ;;  %v176_v4 = vsub.s32 2, %v167_v3  ;;  %v172_v7 = vsub.s32 1, %v167_v3 }
  0x48   :  { %649 = vmatpush3.bf16.msra.mxu1 %v648_v38  ;;  %587 = vmatprep.subr.bf16.mxu0 %v586_v39  ;;  %v602_v24 = vpack.c.bf16 %v120_v21, %v117_v20  ;;  %v116_v25 = vld [vmem:[#allocation5 + $0x240] sm:$0xff]  ;;  %v142_v27 = vld [vmem:[#allocation5 + $0x310] sm:$0xff]  ;;  %v145_v28 = vld [vmem:[#allocation5 + $0x328] sm:$0xff]  ;;  %v767_v38 = vmov 0.0|0.0  }
  0x49   :  { %651 = vmatprep.subr.bf16.mxu1 %v650_v43  ;;  %v123_v29 = vld [vmem:[#allocation5 + $0x278] sm:$0xff]  ;;  %v126_v30 = vld [vmem:[#allocation5 + $0x290] sm:$0xff]  ;;  %v604_v31 = vpack.c.bf16 %v119_v26, %v116_v25  ;;  %v41_v32 = vld [vmem:[#allocation2] sm:$0xff]  ;;  %v667_v33 = vpack.c.bf16 %v145_v28, %v142_v27 }
  0x4a   :  { %v606_v34 = vpack.c.bf16 %v126_v30, %v123_v29  ;;  %v122_v35 = vld [vmem:[#allocation5 + $0x270] sm:$0xff]  ;;  %v125_v36 = vld [vmem:[#allocation5 + $0x288] sm:$0xff]  ;;  %v148_v37 = vld [vmem:[#allocation5 + $0x340] sm:$0xff] }
  0x4b   :  { %589 = vmatpush1.bf16.msra.mxu0 %v588_v49  ;;  %v151_v39 = vld [vmem:[#allocation5 + $0x358] sm:$0xff]  ;;  %v129_v40 = vld [vmem:[#allocation5 + $0x2a8] sm:$0xff]  ;;  %v132_v41 = vld [vmem:[#allocation5 + $0x2c0] sm:$0xff]  ;;  %v608_v42 = vpack.c.bf16 %v125_v36, %v122_v35 }
  0x4c   :  { %653 = vmatpush3.bf16.msra.mxu1 %v652_v51  ;;  %591 = vmatprep.subr.bf16.mxu0 %v590_v52  ;;  %v670_v43 = vpack.c.bf16 %v151_v39, %v148_v37  ;;  %v610_v44 = vpack.c.bf16 %v132_v41, %v129_v40  ;;  %v128_v45 = vld [vmem:[#allocation5 + $0x2a0] sm:$0xff]  ;;  %v131_v46 = vld [vmem:[#allocation5 + $0x2b8] sm:$0xff]  ;;  %v154_v47 = vld [vmem:[#allocation5 + $0x370] sm:$0xff] }
  0x4d   :  { %655 = vmatprep.subr.bf16.mxu1 %v654_v56  ;;  %v157_v48 = vld [vmem:[#allocation5 + $0x388] sm:$0xff]  ;;  %v135_v49 = vld [vmem:[#allocation5 + $0x2d8] sm:$0xff]  ;;  %v138_v50 = vld [vmem:[#allocation5 + $0x2f0] sm:$0xff]  ;;  %v612_v51 = vpack.c.bf16 %v131_v46, %v128_v45 }
  0x4e   :  { %v673_v52 = vpack.c.bf16 %v157_v48, %v154_v47  ;;  %v614_v53 = vpack.c.bf16 %v138_v50, %v135_v49  ;;  %v134_v54 = vld [vmem:[#allocation5 + $0x2d0] sm:$0xff]  ;;  %v137_v55 = vld [vmem:[#allocation5 + $0x2e8] sm:$0xff]  ;;  %v160_v56 = vld [vmem:[#allocation5 + $0x3a0] sm:$0xff] }
  0x4f   :  { %593 = vmatpush1.bf16.msra.mxu0 %v592_v62  ;;  %v163_v57 = vld [vmem:[#allocation5 + $0x3b8] sm:$0xff]  ;;  %v616_v58 = vpack.c.bf16 %v137_v55, %v134_v54  ;;  %v164_v5 = vld [vmem:[%s847_s2] sm:$0x7]  ;;  %s734_s2 = scalar_lea.vmem %s480_s12, 384 }
  0x50   :  { %657 = vmatpush3.bf16.msra.mxu1 %v656_v63  ;;  %595 = vmatprep.subr.bf16.mxu0 %v594_v2  ;;  %v676_v59 = vpack.c.bf16 %v163_v57, %v160_v56  ;;  %v177_v8 = vrot.slane %v164_v5, %v176_v4  ;;  %v173_v10 = vrot.slane %v164_v5, %v172_v7  ;;  %p735_p2 = scmp.ne.s32.totalorder %s480_s12, %s734_s2  ;;  %p740_p4 = scmp.lt.s32.totalorder %s734_s2, %s734_s2 }
  0x51   :  { %659 = vmatprep.subr.bf16.mxu1 %v658_v6  ;;  %v168_v6 = vsub.s32 0, %v167_v3 }
  0x52   :  { %p741_p5 = por %p740_p4, %p739_p3 }
  0x53   :  { %597 = vmatpush1.bf16.msra.mxu0 %v596_v12  ;;  %v169_v9 = vrot.slane %v164_v5, %v168_v6 }
  0x54   :  { %661 = vmatpush3.bf16.msra.mxu1 %v660_v13  ;;  %599 = vmatprep.subr.bf16.mxu0 %v598_v14  ;;  %p742_p6 = pnand %p741_p5, %p735_p2 }
  0x55   :  { %663 = vmatprep.subr.bf16.mxu1 %v662_v18 }
  0x57   :  { %601 = vmatpush1.bf16.msra.mxu0 %v600_v22 }
  0x58   :  { %665 = vmatpush3.bf16.msra.mxu1 %v664_v23  ;;  %603 = vmatprep.subr.bf16.mxu0 %v602_v24 }
  0x59   :  { %666 = vmatprep.subr.bf16.mxu1 %v767_v38 }
  0x5b   :  { %605 = vmatpush1.bf16.msra.mxu0 %v604_v31  ;;  %392 = vmatmul.mubr.f32.vlgmr.msra.gmra.mrb[2].mxu1 %v41_v32 }
  0x5c   :  { %668 = vmatpush3.bf16.msra.mxu1 %v667_v33  ;;  %607 = vmatprep.subr.bf16.mxu0 %v606_v34 }
  0x5d   :  { %669 = vmatprep.subr.bf16.mxu1 %v767_v38  ;;  %551 = vmatprep.mubr.msk.f32.mxu1 %vm768_vm1, %v766_v0 }
  0x5f   :  { %609 = vmatpush1.bf16.msra.mxu0 %v608_v42 }
  0x60   :  { %671 = vmatpush3.bf16.msra.mxu1 %v670_v43  ;;  %611 = vmatprep.subr.bf16.mxu0 %v610_v44 }
  0x61   :  { %672 = vmatprep.subr.bf16.mxu1 %v767_v38 }
  0x63   :  { %613 = vmatpush1.bf16.msra.mxu0 %v612_v51 }
  0x64   :  { %674 = vmatpush3.bf16.msra.mxu1 %v673_v52  ;;  %615 = vmatprep.subr.bf16.mxu0 %v614_v53 }
  0x65   :  { %675 = vmatprep.subr.bf16.mxu1 %v767_v38 }
  0x67   :  { %617 = vmatpush1.bf16.msra.mxu0 %v616_v58 }
  0x68   :  { %677 = vmatpush3.bf16.msra.mxu1 %v676_v59 }
  0x6a   :  { %250 = vmatmul.mubr.f32.vlgmr.msra.gmra.mrb[0].mxu0 %v41_v32 }
  0x6b   :  { %552 = vmatmul.mubr.msk.f32.vlgmr.msra.gmra.mrb[4].mxu1 %vm181_vm0, %v822_v1 }
 0x10e   :  { %v322_v0 = vpop.f32.mrb[0].mxu1 }
 0x10f   :  { %v324_v60 = vpop.f32.mrb[1].mxu1 }
 0x12e   :  { %v523_v62 = vpop.f32.mrb[2].mxu1 }
 0x12f   :  { %v524_v63 = vpop.f32.mrb[3].mxu1 }
 0x130   :  { %v525_v2 = vadd.f32 %v524_v63, %v523_v62 }
 0x132   :  { %v394_v12 = vadd.f32 %v525_v2, %v177_v8 }
 0x13d   :  { %v251_v11 = vpop.f32.mrb[0].mxu0 }
 0x13e   :  { %v252_v1 = vadd.f32 %v251_v11, %v169_v9  ;;  %v463_v13 = vpop.f32.mrb[4].mxu1  ;;  %v253_v14 = vpop.f32.mrb[1].mxu0 }
 0x13f   :  { %v464_v15 = vadd.f32 %v463_v13, %v394_v12  ;;  %v254_v16 = vadd.f32 %v253_v14, %v173_v10  ;;  %v553_v17 = vpop.f32.mrb[5].mxu1 }
 0x140   :  { %v323_v18 = vadd.f32 %v322_v0, %v252_v1 }
 0x141   :  { %v469_v19 = vmax.f32 %v464_v15, 0.0  ;;  %v325_v20 = vadd.f32 %v324_v60, %v254_v16 }
 0x142   :  { %v467_v21 = vmax.f32 %v323_v18, 0.0 }
 0x143   :  { %472 = vst.msk [vmem:[#allocation7 + $0x10] sm:$0xff] %vm181_vm0, %v469_v19  ;;  %v468_v22 = vmax.f32 %v325_v20, 0.0 }
 0x144   :  { %470 = vst [vmem:[#allocation7] sm:$0xff] %v467_v21 }
 0x145   :  { %471 = vst [vmem:[#allocation7 + $0x8] sm:$0xff] %v468_v22 }
 0x146   :  { %745 = shalt.err (!%p742_p6)
}
 0x147   :  { %s746_s15 = scalar_lea.hbm %s848_s3, 384 }
 0x148   :  { %p747_p7 = scmp.ne.s32.totalorder %s848_s3, %s746_s15  ;;  %p750_p8 = scmp.lt.u32.totalorder %s746_s15, %s848_s3 }
 0x14a   :  { %p752_p9 = pnand %p750_p8, %p747_p7 }
 0x14c   :  { %755 = shalt.err (!%p752_p9)
}
 0x14d   :  { %482 = dma.vmem_to_hbm [thread:$0]  %s480_s12, 384, %s848_s3, [#allocation4]  }
 0x14e   :  { %760 = dma.done.wait [#allocation4], 384  }
 0x14f   :  { %761 = vsyncadd [#allocation4], 4294966912 }
 0x150   :  { %486 = vsyncpa [#allocation3], 1 }
 0x151   :  { %487 = vsyncpa [#allocation6], 1 }
 0x152   :  { %488 = vsyncpa [#allocation4], 1 }

</bundles_post_ra>
